<compile_context>
chip_gen: v7x
topology: tpu7x:2x2x1
jax: 0.10.0
libtpu: 0.0.40
codegen_flags: <defaults>
</compile_context>

<pallas_src>
import jax
import jax.numpy as jnp
from jax.experimental import pallas as pl
from jax.experimental.pallas import tpu as pltpu


# ---------------------------------------------------------------------------
# Kernel 1: cascaded 2x2 average-pool pyramid
#   Layout: all (N, C) planes stacked along sublanes -> 2-D (B*H, W) array,
#   W on the TPU lane dimension.
# ---------------------------------------------------------------------------
def _pyramid_kernel(x_ref, pc_ref, o2_ref, o4_ref, o8_ref, o16_ref):
    cur = x_ref
    for o_ref in (o2_ref, o4_ref, o8_ref, o16_ref):
        r2, w2 = o_ref.shape          # rows/cols of this pyramid level
        w = cur.shape[1]              # cols of the previous level
        # Sublane (row) pooling: even rows + odd rows via strided ref loads.
        rows = (cur[pl.ds(0, r2, stride=2), :].astype(jnp.float32)
                + cur[pl.ds(1, r2, stride=2), :].astype(jnp.float32))
        # Lane (col) pooling: small matmul with the resident 0.25-pool matrix.
        # pc[a, j] = 0.25 if a // 2 == j, so the top-left (w, w2) block is the
        # exact pooling matrix for every cascade level.
        o_ref[...] = jnp.dot(rows, pc_ref[:w, :w2],
                             preferred_element_type=jnp.float32)
        cur = o_ref                   # cascade: next level reads this output


def _choose_plane_batch(B, H):
    """Number of planes per grid step: ~2MB input block, >=2 grid steps if
    possible (v7x megacore), sublane dims multiples of 8 when tiled."""
    plane_bytes = H * H * 4 if False else None  # (unused placeholder guard)
    plane_bytes = None
    return B  # overridden below


def _pick_bt(B, H, W):
    plane_bytes = H * W * 4
    target = 2 * 1024 * 1024
    bt = max(1, min(B, target // max(1, plane_bytes)))
    if B >= 2:
        bt = min(bt, B // 2)          # >=2 grid steps -> both v7x TensorCores
    bt = max(1, bt)
    while B % bt:
        bt -= 1
    if bt < B and any((bt * max(1, H >> k)) % 8 for k in range(5)):
        bt = B                        # fall back to one block per call
    return bt


def _get_down_sampling_impl(img):
    """Equivalent of Model.__get_down_sampling.

    img: (N, C, H, W). Returns [img/16, img/8, img/4, img/2, img]
    (smallest first, matching the PyTorch return order). Pooled levels are f32.
    """
    N, C, H, W = img.shape
    B = N * C
    x2 = img.reshape(B * H, W)

    bt = _pick_bt(B, H, W)
    grid = (B // bt,)

    # Resident lane-pooling matrix: pc[a, j] = 0.25 if a // 2 == j.
    ridx = jnp.arange(W, dtype=jnp.int32)[:, None]
    cidx = jnp.arange(W // 2, dtype=jnp.int32)[None, :]
    pc = jnp.where(ridx // 2 == cidx, 0.25, 0.0).astype(jnp.float32)

    out_shapes = tuple(
        jax.ShapeDtypeStruct((B * (H >> k), W >> k), jnp.float32)
        for k in (1, 2, 3, 4))
    out_specs = tuple(
        pl.BlockSpec((bt * (H >> k), W >> k), lambda b: (b, 0))
        for k in (1, 2, 3, 4))

    # Advisory cost: bandwidth-dominated (~1.33x input bytes), small FLOPs.
    bytes_out = sum(4 * B * (H >> k) * (W >> k) for k in (1, 2, 3, 4))
    bytes_in = 4 * B * H * W + int(pc.size) * 4
    flops = 0
    for k in (1, 2, 3, 4):
        r2 = B * (H >> k)
        w_in, w_out = W >> (k - 1), W >> k
        flops += r2 * w_in + 2 * r2 * w_in * w_out
    cost = pl.CostEstimate(flops=flops, transcendentals=0,
                           bytes_accessed=bytes_in + bytes_out)

    outs = pl.pallas_call(
        _pyramid_kernel,
        out_shape=out_shapes,
        grid=grid,
        in_specs=[
            pl.BlockSpec((bt * H, W), lambda b: (b, 0)),
            pl.BlockSpec((W, W // 2), lambda b: (0, 0)),   # resident pool matrix
        ],
        out_specs=out_specs,
        compiler_params=pltpu.CompilerParams(
            dimension_semantics=("parallel",),
            vmem_limit_bytes=32 * 1024 * 1024,
        ),
        cost_estimate=cost,
    )(x2, pc)

    pyr = [o.reshape(N, C, H >> k, W >> k) for k, o in zip((1, 2, 3, 4), outs)]
    # PyTorch order: [img16, img32, img64, img128, img256] == smallest ... original
    return [pyr[3], pyr[2], pyr[1], pyr[0], img]


get_down_sampling = jax.jit(_get_down_sampling_impl)


# ---------------------------------------------------------------------------
# Kernel 2: hinge / relativistic-hinge losses (all four scalars in ONE launch)
# ---------------------------------------------------------------------------
def _hinge_losses_kernel(f_ref, r_ref, hd_ref, hg_ref, gadv_ref, dadv_ref):
    f = f_ref[...].astype(jnp.float32)
    r = r_ref[...].astype(jnp.float32)
    relu = lambda v: jnp.maximum(v, 0.0)

    mean_f = jnp.mean(f)
    mean_r = jnp.mean(r)

    # get_hinge_d: mean(relu(1 - r)) + mean(relu(1 + f))
    hd_ref[0, 0] = jnp.mean(relu(1.0 - r)) + jnp.mean(relu(1.0 + f))
    # get_hinge_g: -mean(f)
    hg_ref[0, 0] = -mean_f

    r_f_diff = r - mean_f
    f_r_diff = f - mean_r
    # get_generator_adv
    gadv_ref[0, 0] = jnp.mean(relu(1.0 + r_f_diff)) + jnp.mean(relu(1.0 - f_r_diff))
    # get_discriminator_adv
    dadv_ref[0, 0] = jnp.mean(relu(1.0 - r_f_diff)) + jnp.mean(relu(1.0 + f_r_diff))


def _hinge_losses_impl(f_preds, r_preds):
    """Returns (hinge_d, hinge_g, generator_adv, discriminator_adv) scalars."""
    # TODO(synk): for very large multi-scale discriminator outputs this should
    # be tiled with an accumulate-then-finalize grid instead of whole-array VMEM.
    f2 = jnp.reshape(f_preds, (-1, f_preds.shape[-1]))
    r2 = jnp.reshape(r_preds, (-1, r_preds.shape[-1]))
    scalar = jax.ShapeDtypeStruct((1, 1), jnp.float32)
    smem = pl.BlockSpec(memory_space=pltpu.MemorySpace.SMEM)
    outs = pl.pallas_call(
        _hinge_losses_kernel,
        out_shape=(scalar, scalar, scalar, scalar),
        in_specs=[
            pl.BlockSpec(memory_space=pltpu.MemorySpace.VMEM),
            pl.BlockSpec(memory_space=pltpu.MemorySpace.VMEM),
        ],
        out_specs=(smem, smem, smem, smem),
    )(f2, r2)
    return tuple(o[0, 0] for o in outs)


hinge_losses = jax.jit(_hinge_losses_impl)


# ---------------------------------------------------------------------------
# JAX-side Model wrapper (only the self-contained math of the PyTorch Model)
# ---------------------------------------------------------------------------
class Model:
    # TODO(synk): PoseEncoder / Generator / PoseDiscriminator /
    # MultiScaledProjectionDiscriminator / Vgg19 and the Adam optimizers /
    # autograd training steps are not defined in the reference source and
    # cannot be translated; only the Model's own compute is implemented.

    def __init__(self):
        self._hinge_cache = {}

    def forward(self, source, source_pose, target_pose):
        # PyTorch Model.forward is `pass` -> returns None.
        return None

    def _losses(self, f_preds, r_preds):
        # Single kernel launch per (f_preds, r_preds) pair; all four scalars cached.
        key = (id(f_preds), id(r_preds))
        hit = self._hinge_cache.get(key)
        if hit is not None and hit[0] is f_preds and hit[1] is r_preds:
            return hit[2]
        vals = hinge_losses(f_preds, r_preds)
        self._hinge_cache[key] = (f_preds, r_preds, vals)
        return vals

    def get_hinge_d(self, f_preds, r_preds):
        return self._losses(f_preds, r_preds)[0]

    def get_hinge_g(self, f_preds, r_preds):
        return self._losses(f_preds, r_preds)[1]

    def get_generator_adv(self, f_preds, r_preds):
        return self._losses(f_preds, r_preds)[2]

    def get_discriminator_adv(self, f_preds, r_preds):
        return self._losses(f_preds, r_preds)[3]

    def get_down_sampling(self, img):
        return get_down_sampling(img)


# ---------------------------------------------------------------------------
# Main
# ---------------------------------------------------------------------------
if __name__ == "__main__":
    key = jax.random.PRNGKey(0)
    k1, k2, k3 = jax.random.split(key, 3)

    # Small shapes consistent with the module (images NCHW, discriminator scores).
    target = jax.random.normal(k1, (2, 4, 16, 16), dtype=jnp.float32)
    f_preds = jax.random.normal(k2, (2, 128), dtype=jnp.float32)
    r_preds = jax.random.normal(k3, (2, 128), dtype=jnp.float32)

    model = Model()

    # --- avg-pool pyramid kernel ---
    pyramid = model.get_down_sampling(target)
    pyramid = jax.block_until_ready(pyramid)

    # Reference check against plain-JAX avg_pool2d(k=2, s=2) chain.
    ref = target
    refs = [target]
    for _ in range(4):
        N, C, H, W = ref.shape
        ref = ref.reshape(N, C, H // 2, 2, W // 2, 2).mean(axis=(3, 5))
        refs.insert(0, ref)  # smallest first
    for got, want in zip(pyramid, refs):
        assert got.shape == want.shape
        assert jnp.allclose(got, want, atol=1e-5), "pyramid mismatch"

    # --- hinge loss kernel (single launch, cached) ---
    hd = model.get_hinge_d(f_preds, r_preds)
    hg = model.get_hinge_g(f_preds, r_preds)
    gadv = model.get_generator_adv(f_preds, r_preds)
    dadv = model.get_discriminator_adv(f_preds, r_preds)
    hd, hg, gadv, dadv = jax.block_until_ready((hd, hg, gadv, dadv))

    relu = lambda v: jnp.maximum(v, 0.0)
    hd_ref = jnp.mean(relu(1.0 - r_preds)) + jnp.mean(relu(1.0 + f_preds))
    hg_ref = -jnp.mean(f_preds)
    r_f = r_preds - jnp.mean(f_preds)
    f_r = f_preds - jnp.mean(r_preds)
    gadv_ref = jnp.mean(relu(1.0 + r_f)) + jnp.mean(relu(1.0 - f_r))
    dadv_ref = jnp.mean(relu(1.0 - r_f)) + jnp.mean(relu(1.0 + f_r))

    assert jnp.allclose(hd, hd_ref, atol=1e-5)
    assert jnp.allclose(hg, hg_ref, atol=1e-5)
    assert jnp.allclose(gadv, gadv_ref, atol=1e-5)
    assert jnp.allclose(dadv, dadv_ref, atol=1e-5)

    # forward() is a no-op in the reference module.
    assert model.forward(None, None, None) is None

    print("KERNEL_OK")
</pallas_src>

<mosaic_0001>
module attributes {stable_mosaic.version = 11 : i64} {
  func.func @_pyramid_kernel(%arg0: i32, %arg1: memref<128x16xf32, #tpu.memory_space<vmem>>, %arg2: memref<16x8xf32, #tpu.memory_space<vmem>>, %arg3: memref<64x8xf32, #tpu.memory_space<vmem>>, %arg4: memref<32x4xf32, #tpu.memory_space<vmem>>, %arg5: memref<16x2xf32, #tpu.memory_space<vmem>>, %arg6: memref<8x1xf32, #tpu.memory_space<vmem>>) attributes {dimension_semantics = [#tpu.dimension_semantics<parallel>], iteration_bounds = array<i64: 1>, scalar_prefetch = 0 : i64, scratch_operands = 0 : i64, tpu.core_type = #tpu.core_type<tc>, window_params = [{transform_indices = @transform_0, window_bounds = array<i64: 128, 16>}, {pipeline_mode = #tpu.pipeline_mode<synchronous>, transform_indices = @transform_1, window_bounds = array<i64: 16, 8>}, {transform_indices = @transform_2, window_bounds = array<i64: 64, 8>}, {transform_indices = @transform_3, window_bounds = array<i64: 32, 4>}, {transform_indices = @transform_4, window_bounds = array<i64: 16, 2>}, {transform_indices = @transform_5, window_bounds = array<i64: 8, 1>}]} {
    %c0 = arith.constant 0 : index
    %c0_0 = arith.constant 0 : index
    %0 = tpu.strided_load %arg1[%c0, %c0_0] {strides = array<i32: 2, 1>} : memref<128x16xf32, #tpu.memory_space<vmem>>, vector<64x16xf32>
    %c1 = arith.constant 1 : index
    %c0_1 = arith.constant 0 : index
    %1 = tpu.strided_load %arg1[%c1, %c0_1] {strides = array<i32: 2, 1>} : memref<128x16xf32, #tpu.memory_space<vmem>>, vector<64x16xf32>
    %2 = arith.addf %0, %1 : vector<64x16xf32>
    %c0_2 = arith.constant 0 : index
    %c0_3 = arith.constant 0 : index
    %3 = vector.load %arg2[%c0_2, %c0_3] : memref<16x8xf32, #tpu.memory_space<vmem>>, vector<16x8xf32>
    %cst = arith.constant dense<0.000000e+00> : vector<64x8xf32>
    %4 = tpu.matmul %2, %3, %cst {dimension_numbers = #tpu.dot_dimension_numbers<[1], [0], [0], [1], [0, 0, 1, 1], [], []>} : vector<64x16xf32>, vector<16x8xf32>, vector<64x8xf32> -> vector<64x8xf32>
    %c0_4 = arith.constant 0 : index
    %c0_5 = arith.constant 0 : index
    %5 = vector.load %arg3[%c0_4, %c0_5] : memref<64x8xf32, #tpu.memory_space<vmem>>, vector<64x8xf32>
    tpu.vector_store %arg3[%c0_4, %c0_5], %4 {strides = array<i32>} : memref<64x8xf32, #tpu.memory_space<vmem>>, vector<64x8xf32>,
    %c0_6 = arith.constant 0 : index
    %c0_7 = arith.constant 0 : index
    %6 = tpu.strided_load %arg3[%c0_6, %c0_7] {strides = array<i32: 2, 1>} : memref<64x8xf32, #tpu.memory_space<vmem>>, vector<32x8xf32>
    %c1_8 = arith.constant 1 : index
    %c0_9 = arith.constant 0 : index
    %7 = tpu.strided_load %arg3[%c1_8, %c0_9] {strides = array<i32: 2, 1>} : memref<64x8xf32, #tpu.memory_space<vmem>>, vector<32x8xf32>
    %8 = arith.addf %6, %7 : vector<32x8xf32>
    %c0_10 = arith.constant 0 : index
    %c0_11 = arith.constant 0 : index
    %9 = vector.load %arg2[%c0_10, %c0_11] : memref<16x8xf32, #tpu.memory_space<vmem>>, vector<8x4xf32>
    %cst_12 = arith.constant dense<0.000000e+00> : vector<32x4xf32>
    %10 = tpu.matmul %8, %9, %cst_12 {dimension_numbers = #tpu.dot_dimension_numbers<[1], [0], [0], [1], [0, 0, 1, 1], [], []>} : vector<32x8xf32>, vector<8x4xf32>, vector<32x4xf32> -> vector<32x4xf32>
    %c0_13 = arith.constant 0 : index
    %c0_14 = arith.constant 0 : index
    %11 = vector.load %arg4[%c0_13, %c0_14] : memref<32x4xf32, #tpu.memory_space<vmem>>, vector<32x4xf32>
    tpu.vector_store %arg4[%c0_13, %c0_14], %10 {strides = array<i32>} : memref<32x4xf32, #tpu.memory_space<vmem>>, vector<32x4xf32>,
    %c0_15 = arith.constant 0 : index
    %c0_16 = arith.constant 0 : index
    %12 = tpu.strided_load %arg4[%c0_15, %c0_16] {strides = array<i32: 2, 1>} : memref<32x4xf32, #tpu.memory_space<vmem>>, vector<16x4xf32>
    %c1_17 = arith.constant 1 : index
    %c0_18 = arith.constant 0 : index
    %13 = tpu.strided_load %arg4[%c1_17, %c0_18] {strides = array<i32: 2, 1>} : memref<32x4xf32, #tpu.memory_space<vmem>>, vector<16x4xf32>
    %14 = arith.addf %12, %13 : vector<16x4xf32>
    %c0_19 = arith.constant 0 : index
    %c0_20 = arith.constant 0 : index
    %15 = vector.load %arg2[%c0_19, %c0_20] : memref<16x8xf32, #tpu.memory_space<vmem>>, vector<4x2xf32>
    %cst_21 = arith.constant dense<0.000000e+00> : vector<16x2xf32>
    %16 = tpu.matmul %14, %15, %cst_21 {dimension_numbers = #tpu.dot_dimension_numbers<[1], [0], [0], [1], [0, 0, 1, 1], [], []>} : vector<16x4xf32>, vector<4x2xf32>, vector<16x2xf32> -> vector<16x2xf32>
    %c0_22 = arith.constant 0 : index
    %c0_23 = arith.constant 0 : index
    %17 = vector.load %arg5[%c0_22, %c0_23] : memref<16x2xf32, #tpu.memory_space<vmem>>, vector<16x2xf32>
    tpu.vector_store %arg5[%c0_22, %c0_23], %16 {strides = array<i32>} : memref<16x2xf32, #tpu.memory_space<vmem>>, vector<16x2xf32>,
    %c0_24 = arith.constant 0 : index
    %c0_25 = arith.constant 0 : index
    %18 = tpu.strided_load %arg5[%c0_24, %c0_25] {strides = array<i32: 2, 1>} : memref<16x2xf32, #tpu.memory_space<vmem>>, vector<8x2xf32>
    %c1_26 = arith.constant 1 : index
    %c0_27 = arith.constant 0 : index
    %19 = tpu.strided_load %arg5[%c1_26, %c0_27] {strides = array<i32: 2, 1>} : memref<16x2xf32, #tpu.memory_space<vmem>>, vector<8x2xf32>
    %20 = arith.addf %18, %19 : vector<8x2xf32>
    %c0_28 = arith.constant 0 : index
    %c0_29 = arith.constant 0 : index
    %21 = vector.load %arg2[%c0_28, %c0_29] : memref<16x8xf32, #tpu.memory_space<vmem>>, vector<2x1xf32>
    %cst_30 = arith.constant dense<0.000000e+00> : vector<8x1xf32>
    %22 = tpu.matmul %20, %21, %cst_30 {dimension_numbers = #tpu.dot_dimension_numbers<[1], [0], [0], [1], [0, 0, 1, 1], [], []>} : vector<8x2xf32>, vector<2x1xf32>, vector<8x1xf32> -> vector<8x1xf32>
    %c0_31 = arith.constant 0 : index
    %c0_32 = arith.constant 0 : index
    %23 = vector.load %arg6[%c0_31, %c0_32] : memref<8x1xf32, #tpu.memory_space<vmem>>, vector<8x1xf32>
    tpu.vector_store %arg6[%c0_31, %c0_32], %22 {strides = array<i32>} : memref<8x1xf32, #tpu.memory_space<vmem>>, vector<8x1xf32>,
    return
  }
  func.func @transform_0(%arg0: i32) -> (i32, i32) {
    %c0_i32 = arith.constant 0 : i32
    %c0_i32_0 = arith.constant 0 : i32
    return %arg0, %c0_i32 : i32, i32
  }
  func.func @transform_1(%arg0: i32) -> (i32, i32) {
    %c0_i32 = arith.constant 0 : i32
    %c0_i32_0 = arith.constant 0 : i32
    %c0_i32_1 = arith.constant 0 : i32
    return %c0_i32, %c0_i32_0 : i32, i32
  }
  func.func @transform_2(%arg0: i32) -> (i32, i32) {
    %c0_i32 = arith.constant 0 : i32
    %c0_i32_0 = arith.constant 0 : i32
    return %arg0, %c0_i32 : i32, i32
  }
  func.func @transform_3(%arg0: i32) -> (i32, i32) {
    %c0_i32 = arith.constant 0 : i32
    %c0_i32_0 = arith.constant 0 : i32
    return %arg0, %c0_i32 : i32, i32
  }
  func.func @transform_4(%arg0: i32) -> (i32, i32) {
    %c0_i32 = arith.constant 0 : i32
    %c0_i32_0 = arith.constant 0 : i32
    return %arg0, %c0_i32 : i32, i32
  }
  func.func @transform_5(%arg0: i32) -> (i32, i32) {
    %c0_i32 = arith.constant 0 : i32
    %c0_i32_0 = arith.constant 0 : i32
    return %arg0, %c0_i32 : i32, i32
  }
}

</mosaic_0001>

<bundles_post_ra>
// kernel: _get_down_sampling_impl.1
= control target key start
LH: loop header
LB: loop body
LE: loop exit
PB: predicated region body
PF: predicated region fallthrough
CT: control target
= control target key end

     0   :  { %11 = vsyncpa [#allocation3], 0  ;;  %s853_s0 = inlined_call_operand.hbm [shape: f32[128,16], index: 0, kind: input, shape index: {}]   ;;  %s854_s1 = inlined_call_operand.vmem [shape: f32[16,8], index: 1, kind: input, shape index: {}]   ;;  %s855_s2 = inlined_call_operand.hbm [shape: f32[64,8], index: 2, kind: output, shape index: {0}]   ;;  %s856_s3 = inlined_call_operand.hbm [shape: f32[32,4], index: 3, kind: output, shape index: {1}]   ;;  %s857_s4 = inlined_call_operand.vmem [shape: f32[16,2], index: 4, kind: output, shape index: {2}]   ;;  %s858_s5 = inlined_call_operand.vmem [shape: f32[8,1], index: 5, kind: output, shape index: {3}]  }
   0x1   :  { %12 = vsyncpa [#allocation4], 0 }
   0x2   :  { %13 = vsyncpa [#allocation7], 0  ;;  %s711_s18 = smov [#allocation2]   ;;  %s639_s22 = scalar_lea.hbm %s853_s0, 2048 }
   0x3   :  { %s19_s19 = sshll.u32 %s711_s18, 4  ;;  %p640_p0 = scmp.ne.s32.totalorder %s853_s0, %s639_s22  ;;  %s20_s19 = int_to_ptr.vmem [resolvable:$true] %s19_s19 }
   0x4   :  { %p643_p1 = scmp.lt.u32.totalorder %s639_s22, %s853_s0 }
   0x6   :  { %p645_p2 = pnand %p643_p1, %p640_p0 }
   0x8   :  { %648 = shalt.err (!%p645_p2)
}
   0x9   :  { %s649_s27 = scalar_lea.vmem %s20_s19, 2048  ;;  %p654_p4 = scmp.lt.s32.totalorder %s20_s19, %s20_s19 }
   0xa   :  { %p650_p3 = scmp.ne.s32.totalorder %s20_s19, %s649_s27  ;;  %p655_p5 = scmp.lt.s32.totalorder %s649_s27, %s649_s27 }
   0xc   :  { %p656_p6 = por %p655_p5, %p654_p4 }
   0xe   :  { %p657_p7 = pnand %p656_p6, %p650_p3 }
  0x10   :  { %660 = shalt.err (!%p657_p7)
}
  0x11   :  { %s712_s28 = smov 128   ;;  %s713_s29 = smov 8  }
  0x12   :  { %25 = dma.hbm_to_vmem [thread:$0]  %s853_s0, 2048, %s20_s19, [#allocation3], %s712_s28, %s712_s28, %s713_s29  }
  0x13   :  { %705 = dma.done.wait [#allocation3], 2048  }
  0x14   :  { %706 = vsyncadd [#allocation3], 4294965248  ;;  %v70_v0 = vld [vmem:[%s854_s1] sm:$0xff]  ;;  %v71_v1 = vld [vmem:[%s854_s1 + $0x8] sm:$0xff]  ;;  %vm72_vm0 = vcmask 130048   ;;  %vm202_vm1 = vcmask 64512  }
  0x15   :  { %v31_v2 = vld [vmem:[#allocation2] ss:$2 sm:$0xff]  ;;  %v628_v3 = vpack.c.bf16 %v71_v1, %v70_v0  ;;  %v47_v4 = vld [vmem:[#allocation2 + $0x1] ss:$2 sm:$0xff]  ;;  %v33_v5 = vld [vmem:[#allocation2 + $0x10] ss:$2 sm:$0xff]  ;;  %610 = vmatprep.subr.mxu1 %v70_v0 }
  0x16   :  { %v49_v6 = vld [vmem:[#allocation2 + $0x11] ss:$2 sm:$0xff]  ;;  %v62_v7 = vadd.f32 %v47_v4, %v31_v2  ;;  %v35_v8 = vld [vmem:[#allocation2 + $0x20] ss:$2 sm:$0xff]  ;;  %v51_v9 = vld [vmem:[#allocation2 + $0x21] ss:$2 sm:$0xff]  ;;  %611 = vmatpush3.msra.mxu1 %v70_v0 }
  0x17   :  { %629 = vmatprep.subr.bf16.mxu0 %v628_v3  ;;  %v63_v10 = vadd.f32 %v49_v6, %v33_v5  ;;  %v64_v11 = vadd.f32 %v51_v9, %v35_v8  ;;  %v37_v12 = vld [vmem:[#allocation2 + $0x30] ss:$2 sm:$0xff]  ;;  %v53_v13 = vld [vmem:[#allocation2 + $0x31] ss:$2 sm:$0xff]  ;;  %v39_v14 = vld [vmem:[#allocation2 + $0x40] ss:$2 sm:$0xff] }
  0x18   :  { %631 = vmatpush3.bf16.msra.mxu0 %v628_v3  ;;  %598 = vmatprep.mubr.msk.f32.mxu0 %vm72_vm0, %v62_v7  ;;  %v55_v15 = vld [vmem:[#allocation2 + $0x41] ss:$2 sm:$0xff]  ;;  %v65_v16 = vadd.f32 %v53_v13, %v37_v12  ;;  %v41_v18 = vld [vmem:[#allocation2 + $0x50] ss:$2 sm:$0xff]  ;;  %v57_v19 = vld [vmem:[#allocation2 + $0x51] ss:$2 sm:$0xff] }
  0x19   :  { %v66_v17 = vadd.f32 %v55_v15, %v39_v14  ;;  %v43_v20 = vld [vmem:[#allocation2 + $0x60] ss:$2 sm:$0xff]  ;;  %v59_v21 = vld [vmem:[#allocation2 + $0x61] ss:$2 sm:$0xff]  ;;  %v67_v22 = vadd.f32 %v57_v19, %v41_v18  ;;  %v45_v24 = vld [vmem:[#allocation2 + $0x70] ss:$2 sm:$0xff] }
  0x1a   :  { %v68_v23 = vadd.f32 %v59_v21, %v43_v20  ;;  %v61_v25 = vld [vmem:[#allocation2 + $0x71] ss:$2 sm:$0xff]  ;;  %v342_v47 = vld [vmem:[%s854_s1] sm:$0xf]  ;;  %vm349_vm2 = vcmask 1043456   ;;  %vm328_vm3 = vcmask 31744  }
  0x1b   :  { %599 = vmatmul.mubr.msk.f32.vlgmr.msra.gmra.mrb[0].mxu0 %vm72_vm0, %v63_v10  ;;  %v69_v26 = vadd.f32 %v61_v25, %v45_v24  ;;  %618 = vmatprep.subr.msk.mxu1 %vm349_vm2, %v342_v47  ;;  %v435_v58 = vld [vmem:[%s854_s1] sm:$0x3]  ;;  %vm439_vm4 = vcmask 1041408   ;;  %v714_v59 = vmov 0.0   ;;  %vm715_vm5 = vmmov 0   ;;  %s716_s21 = smov [#allocation5]  }
  0x1c   :  { %601 = vmatprep.mubr.msk.f32.mxu0 %vm72_vm0, %v64_v11  ;;  %vm428_vm6 = vcmask 15360   ;;  %s520_s22 = sshll.u32 %s716_s21, 4  ;;  %s717_s23 = smov [#allocation6]   ;;  %s521_s22 = int_to_ptr.vmem [resolvable:$true] %s520_s22 }
  0x1d   :  { %s532_s24 = sshll.u32 %s717_s23, 4  ;;  %s661_s25 = scalar_lea.vmem %s521_s22, 1024  ;;  %s813_s24 = int_to_ptr.vmem [resolvable:$true] %s532_s24 }
  0x1e   :  { %p662_p8 = scmp.ne.s32.totalorder %s521_s22, %s661_s25  ;;  %p666_p9 = scmp.lt.s32.totalorder %s521_s22, %s521_s22 }
  0x1f   :  { %602 = vmatmul.mubr.msk.f32.gmra.mrb[2].mxu0 %vm72_vm0, %v65_v16  ;;  %p667_p10 = scmp.lt.s32.totalorder %s661_s25, %s661_s25 }
  0x20   :  { %604 = vmatprep.mubr.msk.f32.mxu0 %vm72_vm0, %v66_v17 }
  0x21   :  { %p668_p11 = por %p667_p10, %p666_p9 }
  0x23   :  { %605 = vmatmul.mubr.msk.f32.gmra.mrb[4].mxu0 %vm72_vm0, %v67_v22  ;;  %p669_p12 = pnand %p668_p11, %p662_p8 }
  0x24   :  { %607 = vmatprep.mubr.msk.f32.mxu0 %vm72_vm0, %v68_v23 }
  0x27   :  { %608 = vmatmul.mubr.msk.f32.gmra.mrb[6].mxu0 %vm72_vm0, %v69_v26 }
  0xee   :  { %v600_v27 = vpop.f32.mrb[0].mxu0 }
  0xef   :  { %204 = vst.msk [vmem:[#allocation5 + $0x8] sm:$0xff] %vm202_vm1, %v600_v27  ;;  %v163_v28 = vpop.f32.mrb[1].mxu0 }
  0xf0   :  { %203 = vst.msk [vmem:[#allocation5] sm:$0xff] %vm202_vm1, %v163_v28 }
  0xf2   :  { %v603_v29 = vpop.f32.mrb[2].mxu0 }
  0xf3   :  { %206 = vst.msk [vmem:[#allocation5 + $0x18] sm:$0xff] %vm202_vm1, %v603_v29  ;;  %v173_v30 = vpop.f32.mrb[3].mxu0 }
  0xf4   :  { %205 = vst.msk [vmem:[#allocation5 + $0x10] sm:$0xff] %vm202_vm1, %v173_v30 }
  0xf6   :  { %v606_v31 = vpop.f32.mrb[4].mxu0 }
  0xf7   :  { %208 = vst.msk [vmem:[#allocation5 + $0x28] sm:$0xff] %vm202_vm1, %v606_v31  ;;  %v183_v32 = vpop.f32.mrb[5].mxu0  ;;  %v211_v33 = vld [vmem:[#allocation5] ss:$2 sm:$0xff]  ;;  %v219_v34 = vld [vmem:[#allocation5 + $0x1] ss:$2 sm:$0xff] }
  0xf8   :  { %207 = vst.msk [vmem:[#allocation5 + $0x20] sm:$0xff] %vm202_vm1, %v183_v32  ;;  %v226_v35 = vadd.f32 %v219_v34, %v211_v33 }
  0xfa   :  { %v609_v36 = vpop.f32.mrb[6].mxu0  ;;  %612 = vmatprep.mubr.msk.f32.mxu1 %vm202_vm1, %v226_v35 }
  0xfb   :  { %210 = vst.msk [vmem:[#allocation5 + $0x38] sm:$0xff] %vm202_vm1, %v609_v36  ;;  %v193_v37 = vpop.f32.mrb[7].mxu0  ;;  %v213_v38 = vld [vmem:[#allocation5 + $0x10] ss:$2 sm:$0xff]  ;;  %v221_v39 = vld [vmem:[#allocation5 + $0x11] ss:$2 sm:$0xff] }
  0xfc   :  { %209 = vst.msk [vmem:[#allocation5 + $0x30] sm:$0xff] %vm202_vm1, %v193_v37  ;;  %v227_v40 = vadd.f32 %v221_v39, %v213_v38 }
  0xfe   :  { %613 = vmatmul.mubr.msk.f32.vlgmr.msra.gmra.mrb[0].mxu1 %vm202_vm1, %v227_v40 }
  0xff   :  { %v215_v41 = vld [vmem:[#allocation5 + $0x20] ss:$2 sm:$0xff]  ;;  %v223_v42 = vld [vmem:[#allocation5 + $0x21] ss:$2 sm:$0xff]  ;;  %619 = vmatpush3.msk.msra.mxu1 %vm349_vm2, %v342_v47 }
 0x100   :  { %v228_v43 = vadd.f32 %v223_v42, %v215_v41  ;;  %623 = vmatprep.subr.mxu1 %v714_v59 }
 0x102   :  { %615 = vmatprep.mubr.msk.f32.mxu1 %vm202_vm1, %v228_v43 }
 0x103   :  { %v217_v44 = vld [vmem:[#allocation5 + $0x30] ss:$2 sm:$0xff]  ;;  %v225_v45 = vld [vmem:[#allocation5 + $0x31] ss:$2 sm:$0xff] }
 0x104   :  { %v229_v46 = vadd.f32 %v225_v45, %v217_v44 }
 0x106   :  { %616 = vmatmul.mubr.msk.f32.gmra.mrb[2].mxu1 %vm202_vm1, %v229_v46 }
 0x1d1   :  { %v614_v48 = vpop.f32.mrb[0].mxu1 }
 0x1d2   :  { %330 = vst.msk [vmem:[#allocation6 + $0x8] sm:$0xff] %vm328_vm3, %v614_v48  ;;  %v309_v49 = vpop.f32.mrb[1].mxu1 }
 0x1d3   :  { %329 = vst.msk [vmem:[#allocation6] sm:$0xff] %vm328_vm3, %v309_v49 }
 0x1d9   :  { %v617_v50 = vpop.f32.mrb[2].mxu1 }
 0x1da   :  { %332 = vst.msk [vmem:[#allocation6 + $0x18] sm:$0xff] %vm328_vm3, %v617_v50  ;;  %v319_v51 = vpop.f32.mrb[3].mxu1  ;;  %v333_v52 = vld [vmem:[#allocation6] ss:$2 sm:$0xff]  ;;  %v337_v53 = vld [vmem:[#allocation6 + $0x1] ss:$2 sm:$0xff] }
 0x1db   :  { %331 = vst.msk [vmem:[#allocation6 + $0x10] sm:$0xff] %vm328_vm3, %v319_v51  ;;  %v340_v54 = vadd.f32 %v337_v53, %v333_v52 }
 0x1dd   :  { %620 = vmatprep.mubr.msk.f32.mxu1 %vm328_vm3, %v340_v54 }
 0x1e2   :  { %v335_v55 = vld [vmem:[#allocation6 + $0x10] ss:$2 sm:$0xff]  ;;  %v339_v56 = vld [vmem:[#allocation6 + $0x11] ss:$2 sm:$0xff] }
 0x1e3   :  { %v341_v57 = vadd.f32 %v339_v56, %v335_v55 }
 0x1e5   :  { %621 = vmatmul.mubr.msk.f32.vlgmr.msra.gmra.mrb[4].mxu1 %vm328_vm3, %v341_v57 }
 0x1e6   :  { %625 = vmatprep.mubr.msk.f32.mxu1 %vm715_vm5, %v714_v59  ;;  %624 = vmatpush3.msk.msra.mxu1 %vm439_vm4, %v435_v58 }
 0x2b8   :  { %v622_v60 = vpop.f32.mrb[4].mxu1 }
 0x2b9   :  { %430 = vst.msk [vmem:[%s857_s4 + $0x8] sm:$0xff] %vm428_vm6, %v622_v60  ;;  %v419_v61 = vpop.f32.mrb[5].mxu1 }
 0x2ba   :  { %429 = vst.msk [vmem:[%s857_s4] sm:$0xff] %vm428_vm6, %v419_v61 }
 0x2c1   :  { %v431_v62 = vld [vmem:[%s857_s4] ss:$2 sm:$0xff]  ;;  %v571_v63 = vld [vmem:[%s857_s4 + $0x1] ss:$2 sm:$0xff] }
 0x2c2   :  { %v434_v0 = vadd.f32 %v571_v63, %v431_v62 }
 0x2c4   :  { %626 = vmatmul.mubr.msk.f32.vlgmr.msra.gmra.mrb[6].mxu1 %vm428_vm6, %v434_v0 }
 0x2c5   :  { %672 = shalt.err (!%p669_p12)
}
 0x2c6   :  { %s673_s4 = scalar_lea.hbm %s855_s2, 1024 }
 0x2c7   :  { %p674_p13 = scmp.ne.s32.totalorder %s855_s2, %s673_s4  ;;  %p677_p0 = scmp.lt.u32.totalorder %s673_s4, %s855_s2 }
 0x2c9   :  { %p679_p1 = pnand %p677_p0, %p674_p13 }
 0x2cb   :  { %682 = shalt.err (!%p679_p1)
}
 0x2cc   :  { %526 = dma.vmem_to_hbm [thread:$0]  %s521_s22, 1024, %s855_s2, [#allocation4], %s712_s28, %s712_s28, %s713_s29  }
 0x2cd   :  { %s683_s0 = scalar_lea.vmem %s813_s24, 512  ;;  %p688_p3 = scmp.lt.s32.totalorder %s813_s24, %s813_s24 }
 0x2ce   :  { %p684_p2 = scmp.ne.s32.totalorder %s813_s24, %s683_s0  ;;  %p689_p4 = scmp.lt.s32.totalorder %s683_s0, %s683_s0 }
 0x2d0   :  { %p690_p5 = por %p689_p4, %p688_p3 }
 0x2d2   :  { %p691_p6 = pnand %p690_p5, %p684_p2 }
 0x2d4   :  { %694 = shalt.err (!%p691_p6)
}
 0x2d5   :  { %s695_s13 = scalar_lea.hbm %s856_s3, 512 }
 0x2d6   :  { %p696_p7 = scmp.ne.s32.totalorder %s856_s3, %s695_s13  ;;  %p699_p8 = scmp.lt.u32.totalorder %s695_s13, %s856_s3 }
 0x2d8   :  { %p701_p9 = pnand %p699_p8, %p696_p7 }
 0x2da   :  { %704 = shalt.err (!%p701_p9)
}
 0x2db   :  { %538 = dma.vmem_to_hbm [thread:$0]  %s813_s24, 512, %s856_s3, [#allocation7], %s712_s28, %s712_s28, %s713_s29   ;;  %vm513_vm7 = vcmask 7168  }
 0x397   :  { %v509_v1 = vpop.f32.mrb[6].mxu1 }
 0x398   :  { %514 = vst.msk [vmem:[%s858_s5] sm:$0xff] %vm513_vm7, %v509_v1  ;;  %v627_v2 = vpop.f32.mrb[7].mxu1 }
 0x399   :  { %707 = dma.done.wait [#allocation4], 1024  }
 0x39a   :  { %708 = vsyncadd [#allocation4], 4294966272 }
 0x39b   :  { %709 = dma.done.wait [#allocation7], 512  }
 0x39c   :  { %710 = vsyncadd [#allocation7], 4294966784 }
 0x39d   :  { %553 = vsyncpa [#allocation3], 1 }
 0x39e   :  { %554 = vsyncpa [#allocation4], 1 }
 0x39f   :  { %555 = vsyncpa [#allocation7], 1 }

</bundles_post_ra>
